<compile_context>
chip_gen: v7x
topology: tpu7x:2x2x1
jax: 0.10.0
libtpu: 0.0.40
codegen_flags: <defaults>
</compile_context>

<pallas_src>
import functools
import math

import jax
import jax.numpy as jnp
from jax.experimental import pallas as pl
from jax.experimental.pallas import tpu as pltpu

NUM_CLASSES = 10
EMB_DIM = 16
EMB_PAD = 16  # embedding table padded to 16 rows (zero rows 10..15)

# order in which (folded) weight tensors are passed to the kernel
_W_ORDER = (
    "c0_w1", "c0_b1",          # GenericMLP(32,64,32) first layer
    "s_w1", "s_b1",            # SetBasedClassifier phi first layer (16,128)
    "w_a", "w_b", "w_c", "b1m",  # folded classifier fc1 (split along concat)
    "cl_w2", "cl_b2",          # classifier fc2 (128,64)
    "cl_w3", "cl_b3",          # classifier fc3 (64,2)
)


def _round_up(x, m):
    return ((x + m - 1) // m) * m


# ------------------------------ fused kernel ------------------------------- #

def _fused_meta_kernel(
    x0_ref, xset_ref, lbl_ref,
    c0_w1, c0_b1, s_w1, s_b1,
    w_a, w_b, w_c, b1m,
    cl_w2, cl_b2, cl_w3, cl_b3,
    out_ref,
    *, set_size_pad):
    f32 = jnp.float32
    bf16 = jnp.bfloat16
    tb = x0_ref.shape[0]
    feat = xset_ref.shape[2]

    # ---- SetBasedClassifier phi layer 1: ONE (tb*S,16)x(16,128) matmul ----
    xs = xset_ref[...].reshape(tb * set_size_pad, feat)                  # (tb*S, 16)
    h = jnp.dot(xs.astype(bf16), s_w1[...],
                preferred_element_type=f32) + s_b1[...]
    h = jnp.maximum(h, 0.0)                                              # (tb*S, 128)
    acc = h.reshape(tb, set_size_pad, h.shape[-1]).sum(axis=1)           # (tb, 128)

    # ---- layer component 0: GenericMLP(32,64,...) hidden layer ----
    h0 = jnp.maximum(
        jnp.dot(x0_ref[...].astype(bf16), c0_w1[...],
                preferred_element_type=f32) + c0_b1[...], 0.0)           # (tb, 64)

    # ---- label component: Embedding(10,16) as one-hot matmul (table folded) ----
    lbl = lbl_ref[...]                                                   # (tb, 1) int32
    iota = jax.lax.broadcasted_iota(jnp.int32, (tb, w_c.shape[0]), 1)
    onehot = (iota == lbl).astype(bf16)                                  # (tb, 16)

    # ---- classifier fc1 (concat + both components' 2nd linears pre-folded) ----
    y = (jnp.dot(h0.astype(bf16), w_a[...], preferred_element_type=f32)
         + jnp.dot(acc.astype(bf16), w_b[...], preferred_element_type=f32)
         + jnp.dot(onehot, w_c[...], preferred_element_type=f32)
         + b1m[...])
    y = jnp.maximum(y, 0.0)                                              # (tb, 128)
    y = jnp.maximum(
        jnp.dot(y.astype(bf16), cl_w2[...], preferred_element_type=f32)
        + cl_b2[...], 0.0)                                               # (tb, 64)
    y = (jnp.dot(y.astype(bf16), cl_w3[...], preferred_element_type=f32)
         + cl_b3[...])                                                   # (tb, 2)
    out_ref[...] = y.astype(out_ref.dtype)


# ------------------------------ weight folding ------------------------------ #

def _fold_params(p, set_size, set_size_pad):
    """Fold consecutive linear layers (concat + classifier fc1) on the host."""
    bf16 = jnp.bfloat16
    w_a = p["c0_w2"] @ p["cl_w1a"]                                   # (64, 128)
    w_b = p["s_w2"] @ p["cl_w1b"]                                    # (128, 128)
    w_c = p["emb_tab"] @ p["cl_w1c"]                                 # (16, 128)
    b1m = (p["cl_b1"]
           + p["c0_b2"] @ p["cl_w1a"]
           + float(set_size) * (p["s_b2"] @ p["cl_w1b"]))            # (1, 128)
    if set_size_pad != set_size:
        # zero-padded set rows each contribute relu(s_b1) to the phi sum;
        # remove that contribution from the folded bias.
        b1m = b1m - float(set_size_pad - set_size) * (
            jnp.maximum(p["s_b1"], 0.0) @ w_b)
    return dict(
        c0_w1=p["c0_w1"].astype(bf16), c0_b1=p["c0_b1"],
        s_w1=p["s_w1"].astype(bf16), s_b1=p["s_b1"],
        w_a=w_a.astype(bf16), w_b=w_b.astype(bf16), w_c=w_c.astype(bf16),
        b1m=b1m.astype(jnp.float32),
        cl_w2=p["cl_w2"].astype(bf16), cl_b2=p["cl_b2"],
        cl_w3=p["cl_w3"].astype(bf16), cl_b3=p["cl_b3"],
    )


# ------------------------------ forward wrapper ----------------------------- #

@functools.partial(jax.jit, static_argnames=("tile_b",))
def meta_model_forward(params, x0, x_set, labels, tile_b=1024):
    """
    x0:     (B, 32)     float32
    x_set:  (B, S, 16)  float32
    labels: (B,)        int32
    returns (B, 2)      float32
    """
    B, S, F = x_set.shape
    b8 = _round_up(B, 8)
    tb = min(tile_b, b8)
    if b8 > 8:
        # keep at least 2 batch tiles so both v7x TensorCores get work (megacore)
        tb = min(tb, _round_up(-(-b8 // 2), 8))
    tb = max(tb, 8)
    B_pad = _round_up(B, tb)
    S_pad = _round_up(S, 8)          # keep the in-kernel reshape layout-preserving

    pad_b, pad_s = B_pad - B, S_pad - S
    if pad_b or pad_s:
        x_set = jnp.pad(x_set, ((0, pad_b), (0, pad_s), (0, 0)))
    if pad_b:
        x0 = jnp.pad(x0, ((0, pad_b), (0, 0)))
        labels = jnp.pad(labels, ((0, pad_b),))
    lbl2 = labels.astype(jnp.int32).reshape(B_pad, 1)

    w = _fold_params(params, S, S_pad)

    def _const_spec(a):
        nd = a.ndim
        return pl.BlockSpec(tuple(a.shape), lambda i, _nd=nd: (0,) * _nd)

    in_specs = [
        pl.BlockSpec((tb, x0.shape[1]), lambda i: (i, 0)),      # x0 tile
        pl.BlockSpec((tb, S_pad, F), lambda i: (i, 0, 0)),      # x_set tile (batch-major)
        pl.BlockSpec((tb, 1), lambda i: (i, 0)),                # labels tile
    ] + [_const_spec(w[k]) for k in _W_ORDER]                   # resident weights

    # advisory cost estimate for XLA scheduling around this tiny custom call
    flops = int(2 * B_pad * (S_pad * F * 128 + 32 * 64 + 64 * 128
                             + 128 * 128 + 16 * 128 + 128 * 64 + 64 * 2))
    bytes_accessed = int(x0.size * 4 + x_set.size * 4 + lbl2.size * 4
                         + B_pad * 2 * 4
                         + sum(int(v.size) * v.dtype.itemsize for v in w.values()))

    out = pl.pallas_call(
        functools.partial(_fused_meta_kernel, set_size_pad=S_pad),
        out_shape=jax.ShapeDtypeStruct((B_pad, 2), jnp.float32),
        grid_spec=pltpu.PrefetchScalarGridSpec(
            num_scalar_prefetch=0,
            grid=(B_pad // tb,),
            in_specs=in_specs,
            out_specs=pl.BlockSpec((tb, 2), lambda i: (i, 0)),
        ),
        compiler_params=pltpu.CompilerParams(
            dimension_semantics=("parallel",),
            vmem_limit_bytes=32 * 1024 * 1024),
        cost_estimate=pl.CostEstimate(flops=flops, transcendentals=0,
                                      bytes_accessed=bytes_accessed),
    )(x0, x_set, lbl2, *(w[k] for k in _W_ORDER))

    return out[:B]


# ------------------------------ parameter setup ----------------------------- #

def _torch_linear_init(key, fan_in, fan_out):
    """nn.Linear-style init (uniform +-1/sqrt(fan_in)); W stored (fan_in, fan_out)."""
    kw, kb = jax.random.split(key)
    bound = 1.0 / math.sqrt(fan_in)
    w = jax.random.uniform(kw, (fan_in, fan_out), jnp.float32, -bound, bound)
    b = jax.random.uniform(kb, (1, fan_out), jnp.float32, -bound, bound)
    return w, b


def init_meta_model_params(key):
    keys = jax.random.split(key, 8)
    p = {}
    # layer component 0: GenericMLP (32, 64, 32)
    p["c0_w1"], p["c0_b1"] = _torch_linear_init(keys[0], 32, 64)
    p["c0_w2"], p["c0_b2"] = _torch_linear_init(keys[1], 64, 32)
    # layer component 1: SetBasedClassifier(16) -> phi = MLP (16, 128, 64)
    p["s_w1"], p["s_b1"] = _torch_linear_init(keys[2], 16, 128)
    p["s_w2"], p["s_b2"] = _torch_linear_init(keys[3], 128, 64)
    # label component: nn.Embedding(10, 16), N(0,1); zero-padded to 16 rows
    emb = jax.random.normal(keys[4], (NUM_CLASSES, EMB_DIM), jnp.float32)
    p["emb_tab"] = jnp.pad(emb, ((0, EMB_PAD - NUM_CLASSES), (0, 0)))
    # classifier: GenericMLP (112, 128, 64, 2); fc1 weight split along the
    # concat boundaries (comp0: 0..32, comp1: 32..96, emb: 96..112)
    cl_w1, p["cl_b1"] = _torch_linear_init(keys[5], 112, 128)
    p["cl_w1a"] = cl_w1[:32]
    p["cl_w1b"] = cl_w1[32:96]
    p["cl_w1c"] = cl_w1[96:112]
    p["cl_w2"], p["cl_b2"] = _torch_linear_init(keys[6], 128, 64)
    p["cl_w3"], p["cl_b3"] = _torch_linear_init(keys[7], 64, 2)
    return p


# ----------------------------- pure-JAX reference --------------------------- #

def meta_model_reference(p, x0, x_set, labels):
    h0 = jnp.maximum(x0 @ p["c0_w1"] + p["c0_b1"], 0.0)
    comp0 = h0 @ p["c0_w2"] + p["c0_b2"]
    h1 = jnp.maximum(jnp.einsum("bsf,fh->bsh", x_set, p["s_w1"]) + p["s_b1"], 0.0)
    comp1 = (h1 @ p["s_w2"] + p["s_b2"]).sum(axis=1)          # SUM pooling over the set
    emb = p["emb_tab"][labels]
    cat = jnp.concatenate([comp0, comp1, emb], axis=1)        # (B, 112)
    cl_w1 = jnp.concatenate([p["cl_w1a"], p["cl_w1b"], p["cl_w1c"]], axis=0)
    y = jnp.maximum(cat @ cl_w1 + p["cl_b1"], 0.0)
    y = jnp.maximum(y @ p["cl_w2"] + p["cl_b2"], 0.0)
    return y @ p["cl_w3"] + p["cl_b3"]


# ---------------------------------- main ----------------------------------- #

if __name__ == "__main__":
    key = jax.random.PRNGKey(0)
    k_params, k0, k1, k2 = jax.random.split(key, 4)

    params = init_meta_model_params(k_params)

    B, S = 2, 8
    x0 = jax.random.normal(k0, (B, 32), jnp.float32)
    x_set = jax.random.normal(k1, (B, S, 16), jnp.float32)
    labels = jax.random.randint(k2, (B,), 0, NUM_CLASSES, jnp.int32)

    out = meta_model_forward(params, x0, x_set, labels)
    jax.block_until_ready(out)
    assert out.shape == (B, 2) and out.dtype == jnp.float32
    assert bool(jnp.all(jnp.isfinite(out)))

    ref = meta_model_reference(params, x0, x_set, labels)
    # bf16 MXU operands -> loose tolerance vs. the f32 reference
    assert jnp.allclose(out, ref, rtol=1e-1, atol=2e-1)

    print("KERNEL_OK")
</pallas_src>

<mosaic_0001>
module attributes {stable_mosaic.version = 11 : i64} {
  func.func @_fused_meta_kernel(%arg0: i32, %arg1: memref<8x32xf32, #tpu.memory_space<vmem>>, %arg2: memref<8x8x16xf32, #tpu.memory_space<vmem>>, %arg3: memref<8x1xi32, #tpu.memory_space<vmem>>, %arg4: memref<32x64xbf16, #tpu.memory_space<vmem>>, %arg5: memref<1x64xf32, #tpu.memory_space<vmem>>, %arg6: memref<16x128xbf16, #tpu.memory_space<vmem>>, %arg7: memref<1x128xf32, #tpu.memory_space<vmem>>, %arg8: memref<64x128xbf16, #tpu.memory_space<vmem>>, %arg9: memref<128x128xbf16, #tpu.memory_space<vmem>>, %arg10: memref<16x128xbf16, #tpu.memory_space<vmem>>, %arg11: memref<1x128xf32, #tpu.memory_space<vmem>>, %arg12: memref<128x64xbf16, #tpu.memory_space<vmem>>, %arg13: memref<1x64xf32, #tpu.memory_space<vmem>>, %arg14: memref<64x2xbf16, #tpu.memory_space<vmem>>, %arg15: memref<1x2xf32, #tpu.memory_space<vmem>>, %arg16: memref<8x2xf32, #tpu.memory_space<vmem>>) attributes {dimension_semantics = [#tpu.dimension_semantics<parallel>], iteration_bounds = array<i64: 1>, scalar_prefetch = 0 : i64, scratch_operands = 0 : i64, tpu.core_type = #tpu.core_type<tc>, window_params = [{transform_indices = @transform_0, window_bounds = array<i64: 8, 32>}, {transform_indices = @transform_1, window_bounds = array<i64: 8, 8, 16>}, {transform_indices = @transform_2, window_bounds = array<i64: 8, 1>}, {pipeline_mode = #tpu.pipeline_mode<synchronous>, transform_indices = @transform_3, window_bounds = array<i64: 32, 64>}, {pipeline_mode = #tpu.pipeline_mode<synchronous>, transform_indices = @transform_4, window_bounds = array<i64: 1, 64>}, {pipeline_mode = #tpu.pipeline_mode<synchronous>, transform_indices = @transform_5, window_bounds = array<i64: 16, 128>}, {pipeline_mode = #tpu.pipeline_mode<synchronous>, transform_indices = @transform_6, window_bounds = array<i64: 1, 128>}, {pipeline_mode = #tpu.pipeline_mode<synchronous>, transform_indices = @transform_7, window_bounds = array<i64: 64, 128>}, {pipeline_mode = #tpu.pipeline_mode<synchronous>, transform_indices = @transform_8, window_bounds = array<i64: 128, 128>}, {pipeline_mode = #tpu.pipeline_mode<synchronous>, transform_indices = @transform_9, window_bounds = array<i64: 16, 128>}, {pipeline_mode = #tpu.pipeline_mode<synchronous>, transform_indices = @transform_10, window_bounds = array<i64: 1, 128>}, {pipeline_mode = #tpu.pipeline_mode<synchronous>, transform_indices = @transform_11, window_bounds = array<i64: 128, 64>}, {pipeline_mode = #tpu.pipeline_mode<synchronous>, transform_indices = @transform_12, window_bounds = array<i64: 1, 64>}, {pipeline_mode = #tpu.pipeline_mode<synchronous>, transform_indices = @transform_13, window_bounds = array<i64: 64, 2>}, {pipeline_mode = #tpu.pipeline_mode<synchronous>, transform_indices = @transform_14, window_bounds = array<i64: 1, 2>}, {transform_indices = @transform_15, window_bounds = array<i64: 8, 2>}]} {
    %c0 = arith.constant 0 : index
    %c0_0 = arith.constant 0 : index
    %c0_1 = arith.constant 0 : index
    %0 = vector.load %arg2[%c0, %c0_0, %c0_1] : memref<8x8x16xf32, #tpu.memory_space<vmem>>, vector<8x8x16xf32>
    %1 = vector.shape_cast %0 : vector<8x8x16xf32> to vector<64x16xf32>
    %2 = arith.truncf %1 : vector<64x16xf32> to vector<64x16xbf16>
    %c0_2 = arith.constant 0 : index
    %c0_3 = arith.constant 0 : index
    %3 = vector.load %arg6[%c0_2, %c0_3] : memref<16x128xbf16, #tpu.memory_space<vmem>>, vector<16x128xbf16>
    %cst = arith.constant dense<0.000000e+00> : vector<64x128xf32>
    %4 = tpu.matmul %2, %3, %cst {dimension_numbers = #tpu.dot_dimension_numbers<[1], [0], [0], [1], [0, 0, 1, 1], [], []>} : vector<64x16xbf16>, vector<16x128xbf16>, vector<64x128xf32> -> vector<64x128xf32>
    %c0_4 = arith.constant 0 : index
    %c0_5 = arith.constant 0 : index
    %5 = vector.load %arg7[%c0_4, %c0_5] : memref<1x128xf32, #tpu.memory_space<vmem>>, vector<1x128xf32>
    %6 = vector.broadcast %5 : vector<1x128xf32> to vector<64x128xf32>
    %7 = arith.addf %4, %6 : vector<64x128xf32>
    %cst_6 = arith.constant 0.000000e+00 : f32
    %8 = vector.broadcast %cst_6 : f32 to vector<64x128xf32>
    %9 = arith.maximumf %7, %8 : vector<64x128xf32>
    %10 = vector.shape_cast %9 : vector<64x128xf32> to vector<8x8x128xf32>
    %cst_7 = arith.constant dense<0.000000e+00> : vector<8x128xf32>
    %11 = vector.multi_reduction <add>, %10, %cst_7 [1] : vector<8x8x128xf32> to vector<8x128xf32>
    %c0_8 = arith.constant 0 : index
    %c0_9 = arith.constant 0 : index
    %12 = vector.load %arg1[%c0_8, %c0_9] : memref<8x32xf32, #tpu.memory_space<vmem>>, vector<8x32xf32>
    %13 = arith.truncf %12 : vector<8x32xf32> to vector<8x32xbf16>
    %c0_10 = arith.constant 0 : index
    %c0_11 = arith.constant 0 : index
    %14 = vector.load %arg4[%c0_10, %c0_11] : memref<32x64xbf16, #tpu.memory_space<vmem>>, vector<32x64xbf16>
    %cst_12 = arith.constant dense<0.000000e+00> : vector<8x64xf32>
    %15 = tpu.matmul %13, %14, %cst_12 {dimension_numbers = #tpu.dot_dimension_numbers<[1], [0], [0], [1], [0, 0, 1, 1], [], []>} : vector<8x32xbf16>, vector<32x64xbf16>, vector<8x64xf32> -> vector<8x64xf32>
    %c0_13 = arith.constant 0 : index
    %c0_14 = arith.constant 0 : index
    %16 = vector.load %arg5[%c0_13, %c0_14] : memref<1x64xf32, #tpu.memory_space<vmem>>, vector<1x64xf32>
    %17 = vector.broadcast %16 : vector<1x64xf32> to vector<8x64xf32>
    %18 = arith.addf %15, %17 : vector<8x64xf32>
    %cst_15 = arith.constant 0.000000e+00 : f32
    %19 = vector.broadcast %cst_15 : f32 to vector<8x64xf32>
    %20 = arith.maximumf %18, %19 : vector<8x64xf32>
    %c0_16 = arith.constant 0 : index
    %c0_17 = arith.constant 0 : index
    %21 = vector.load %arg3[%c0_16, %c0_17] : memref<8x1xi32, #tpu.memory_space<vmem>>, vector<8x1xi32>
    %22 = tpu.iota {dimensions = array<i32: 1>} : vector<8x16xi32>
    %23 = vector.broadcast %21 : vector<8x1xi32> to vector<8x16xi32>
    %24 = arith.cmpi eq, %22, %23 : vector<8x16xi32>
    %25 = arith.extui %24 : vector<8x16xi1> to vector<8x16xi32>
    %26 = arith.sitofp %25 : vector<8x16xi32> to vector<8x16xf32>
    %27 = arith.truncf %26 : vector<8x16xf32> to vector<8x16xbf16>
    %28 = arith.truncf %20 : vector<8x64xf32> to vector<8x64xbf16>
    %c0_18 = arith.constant 0 : index
    %c0_19 = arith.constant 0 : index
    %29 = vector.load %arg8[%c0_18, %c0_19] : memref<64x128xbf16, #tpu.memory_space<vmem>>, vector<64x128xbf16>
    %cst_20 = arith.constant dense<0.000000e+00> : vector<8x128xf32>
    %30 = tpu.matmul %28, %29, %cst_20 {dimension_numbers = #tpu.dot_dimension_numbers<[1], [0], [0], [1], [0, 0, 1, 1], [], []>} : vector<8x64xbf16>, vector<64x128xbf16>, vector<8x128xf32> -> vector<8x128xf32>
    %31 = arith.truncf %11 : vector<8x128xf32> to vector<8x128xbf16>
    %c0_21 = arith.constant 0 : index
    %c0_22 = arith.constant 0 : index
    %32 = vector.load %arg9[%c0_21, %c0_22] : memref<128x128xbf16, #tpu.memory_space<vmem>>, vector<128x128xbf16>
    %cst_23 = arith.constant dense<0.000000e+00> : vector<8x128xf32>
    %33 = tpu.matmul %31, %32, %cst_23 {dimension_numbers = #tpu.dot_dimension_numbers<[1], [0], [0], [1], [0, 0, 1, 1], [], []>} : vector<8x128xbf16>, vector<128x128xbf16>, vector<8x128xf32> -> vector<8x128xf32>
    %34 = arith.addf %30, %33 : vector<8x128xf32>
    %c0_24 = arith.constant 0 : index
    %c0_25 = arith.constant 0 : index
    %35 = vector.load %arg10[%c0_24, %c0_25] : memref<16x128xbf16, #tpu.memory_space<vmem>>, vector<16x128xbf16>
    %cst_26 = arith.constant dense<0.000000e+00> : vector<8x128xf32>
    %36 = tpu.matmul %27, %35, %cst_26 {dimension_numbers = #tpu.dot_dimension_numbers<[1], [0], [0], [1], [0, 0, 1, 1], [], []>} : vector<8x16xbf16>, vector<16x128xbf16>, vector<8x128xf32> -> vector<8x128xf32>
    %37 = arith.addf %34, %36 : vector<8x128xf32>
    %c0_27 = arith.constant 0 : index
    %c0_28 = arith.constant 0 : index
    %38 = vector.load %arg11[%c0_27, %c0_28] : memref<1x128xf32, #tpu.memory_space<vmem>>, vector<1x128xf32>
    %39 = vector.broadcast %38 : vector<1x128xf32> to vector<8x128xf32>
    %40 = arith.addf %37, %39 : vector<8x128xf32>
    %cst_29 = arith.constant 0.000000e+00 : f32
    %41 = vector.broadcast %cst_29 : f32 to vector<8x128xf32>
    %42 = arith.maximumf %40, %41 : vector<8x128xf32>
    %43 = arith.truncf %42 : vector<8x128xf32> to vector<8x128xbf16>
    %c0_30 = arith.constant 0 : index
    %c0_31 = arith.constant 0 : index
    %44 = vector.load %arg12[%c0_30, %c0_31] : memref<128x64xbf16, #tpu.memory_space<vmem>>, vector<128x64xbf16>
    %cst_32 = arith.constant dense<0.000000e+00> : vector<8x64xf32>
    %45 = tpu.matmul %43, %44, %cst_32 {dimension_numbers = #tpu.dot_dimension_numbers<[1], [0], [0], [1], [0, 0, 1, 1], [], []>} : vector<8x128xbf16>, vector<128x64xbf16>, vector<8x64xf32> -> vector<8x64xf32>
    %c0_33 = arith.constant 0 : index
    %c0_34 = arith.constant 0 : index
    %46 = vector.load %arg13[%c0_33, %c0_34] : memref<1x64xf32, #tpu.memory_space<vmem>>, vector<1x64xf32>
    %47 = vector.broadcast %46 : vector<1x64xf32> to vector<8x64xf32>
    %48 = arith.addf %45, %47 : vector<8x64xf32>
    %cst_35 = arith.constant 0.000000e+00 : f32
    %49 = vector.broadcast %cst_35 : f32 to vector<8x64xf32>
    %50 = arith.maximumf %48, %49 : vector<8x64xf32>
    %51 = arith.truncf %50 : vector<8x64xf32> to vector<8x64xbf16>
    %c0_36 = arith.constant 0 : index
    %c0_37 = arith.constant 0 : index
    %52 = vector.load %arg14[%c0_36, %c0_37] : memref<64x2xbf16, #tpu.memory_space<vmem>>, vector<64x2xbf16>
    %cst_38 = arith.constant dense<0.000000e+00> : vector<8x2xf32>
    %53 = tpu.matmul %51, %52, %cst_38 {dimension_numbers = #tpu.dot_dimension_numbers<[1], [0], [0], [1], [0, 0, 1, 1], [], []>} : vector<8x64xbf16>, vector<64x2xbf16>, vector<8x2xf32> -> vector<8x2xf32>
    %c0_39 = arith.constant 0 : index
    %c0_40 = arith.constant 0 : index
    %54 = vector.load %arg15[%c0_39, %c0_40] : memref<1x2xf32, #tpu.memory_space<vmem>>, vector<1x2xf32>
    %55 = vector.broadcast %54 : vector<1x2xf32> to vector<8x2xf32>
    %56 = arith.addf %53, %55 : vector<8x2xf32>
    %c0_41 = arith.constant 0 : index
    %c0_42 = arith.constant 0 : index
    %57 = vector.load %arg16[%c0_41, %c0_42] : memref<8x2xf32, #tpu.memory_space<vmem>>, vector<8x2xf32>
    tpu.vector_store %arg16[%c0_41, %c0_42], %56 {strides = array<i32>} : memref<8x2xf32, #tpu.memory_space<vmem>>, vector<8x2xf32>,
    return
  }
  func.func @transform_0(%arg0: i32) -> (i32, i32) {
    %c0_i32 = arith.constant 0 : i32
    %c0_i32_0 = arith.constant 0 : i32
    return %arg0, %c0_i32 : i32, i32
  }
  func.func @transform_1(%arg0: i32) -> (i32, i32, i32) {
    %c0_i32 = arith.constant 0 : i32
    %c0_i32_0 = arith.constant 0 : i32
    %c0_i32_1 = arith.constant 0 : i32
    return %arg0, %c0_i32, %c0_i32_0 : i32, i32, i32
  }
  func.func @transform_2(%arg0: i32) -> (i32, i32) {
    %c0_i32 = arith.constant 0 : i32
    %c0_i32_0 = arith.constant 0 : i32
    return %arg0, %c0_i32 : i32, i32
  }
  func.func @transform_3(%arg0: i32) -> (i32, i32) {
    %c0_i32 = arith.constant 0 : i32
    %c0_i32_0 = arith.constant 0 : i32
    %c0_i32_1 = arith.constant 0 : i32
    return %c0_i32, %c0_i32_0 : i32, i32
  }
  func.func @transform_4(%arg0: i32) -> (i32, i32) {
    %c0_i32 = arith.constant 0 : i32
    %c0_i32_0 = arith.constant 0 : i32
    %c0_i32_1 = arith.constant 0 : i32
    return %c0_i32, %c0_i32_0 : i32, i32
  }
  func.func @transform_5(%arg0: i32) -> (i32, i32) {
    %c0_i32 = arith.constant 0 : i32
    %c0_i32_0 = arith.constant 0 : i32
    %c0_i32_1 = arith.constant 0 : i32
    return %c0_i32, %c0_i32_0 : i32, i32
  }
  func.func @transform_6(%arg0: i32) -> (i32, i32) {
    %c0_i32 = arith.constant 0 : i32
    %c0_i32_0 = arith.constant 0 : i32
    %c0_i32_1 = arith.constant 0 : i32
    return %c0_i32, %c0_i32_0 : i32, i32
  }
  func.func @transform_7(%arg0: i32) -> (i32, i32) {
    %c0_i32 = arith.constant 0 : i32
    %c0_i32_0 = arith.constant 0 : i32
    %c0_i32_1 = arith.constant 0 : i32
    return %c0_i32, %c0_i32_0 : i32, i32
  }
  func.func @transform_8(%arg0: i32) -> (i32, i32) {
    %c0_i32 = arith.constant 0 : i32
    %c0_i32_0 = arith.constant 0 : i32
    %c0_i32_1 = arith.constant 0 : i32
    return %c0_i32, %c0_i32_0 : i32, i32
  }
  func.func @transform_9(%arg0: i32) -> (i32, i32) {
    %c0_i32 = arith.constant 0 : i32
    %c0_i32_0 = arith.constant 0 : i32
    %c0_i32_1 = arith.constant 0 : i32
    return %c0_i32, %c0_i32_0 : i32, i32
  }
  func.func @transform_10(%arg0: i32) -> (i32, i32) {
    %c0_i32 = arith.constant 0 : i32
    %c0_i32_0 = arith.constant 0 : i32
    %c0_i32_1 = arith.constant 0 : i32
    return %c0_i32, %c0_i32_0 : i32, i32
  }
  func.func @transform_11(%arg0: i32) -> (i32, i32) {
    %c0_i32 = arith.constant 0 : i32
    %c0_i32_0 = arith.constant 0 : i32
    %c0_i32_1 = arith.constant 0 : i32
    return %c0_i32, %c0_i32_0 : i32, i32
  }
  func.func @transform_12(%arg0: i32) -> (i32, i32) {
    %c0_i32 = arith.constant 0 : i32
    %c0_i32_0 = arith.constant 0 : i32
    %c0_i32_1 = arith.constant 0 : i32
    return %c0_i32, %c0_i32_0 : i32, i32
  }
  func.func @transform_13(%arg0: i32) -> (i32, i32) {
    %c0_i32 = arith.constant 0 : i32
    %c0_i32_0 = arith.constant 0 : i32
    %c0_i32_1 = arith.constant 0 : i32
    return %c0_i32, %c0_i32_0 : i32, i32
  }
  func.func @transform_14(%arg0: i32) -> (i32, i32) {
    %c0_i32 = arith.constant 0 : i32
    %c0_i32_0 = arith.constant 0 : i32
    %c0_i32_1 = arith.constant 0 : i32
    return %c0_i32, %c0_i32_0 : i32, i32
  }
  func.func @transform_15(%arg0: i32) -> (i32, i32) {
    %c0_i32 = arith.constant 0 : i32
    %c0_i32_0 = arith.constant 0 : i32
    return %arg0, %c0_i32 : i32, i32
  }
}

</mosaic_0001>

<bundles_post_ra>
// kernel: meta_model_forward.1
= control target key start
LH: loop header
LB: loop body
LE: loop exit
PB: predicated region body
PF: predicated region fallthrough
CT: control target
= control target key end

     0   :  { %v976_v1 = vmov 0.0   ;;  %vm977_vm0 = vmmov 0   ;;  %vm78_vm1 = vcmask 130048   ;;  %v978_v5 = vmov 0   ;;  %s1240_s5 = inlined_call_operand.vmem [shape: bf16[16,128], index: 5, kind: input, shape index: {}]   ;;  %s1241_s1 = inlined_call_operand.vmem [shape: f32[8,8,16], index: 1, kind: input, shape index: {}]   ;;  %s1242_s3 = inlined_call_operand.vmem [shape: bf16[32,64], index: 3, kind: input, shape index: {}]   ;;  %s1243_s0 = inlined_call_operand.vmem [shape: f32[8,32], index: 0, kind: input, shape index: {}]   ;;  %s1244_s2 = inlined_call_operand.vmem [shape: s32[8,1], index: 2, kind: input, shape index: {}]   ;;  %s1245_s8 = inlined_call_operand.vmem [shape: bf16[128,128], index: 8, kind: input, shape index: {}]   ;;  %s1246_s7 = inlined_call_operand.vmem [shape: bf16[64,128], index: 7, kind: input, shape index: {}]   ;;  %s1247_s9 = inlined_call_operand.vmem [shape: bf16[16,128], index: 9, kind: input, shape index: {}]   ;;  %s1248_s11 = inlined_call_operand.vmem [shape: bf16[128,64], index: 11, kind: input, shape index: {}]   ;;  %s1249_s6 = inlined_call_operand.vmem [shape: f32[1,128], index: 6, kind: input, shape index: {}]   ;;  %s1250_s4 = inlined_call_operand.vmem [shape: f32[1,64], index: 4, kind: input, shape index: {}]   ;;  %s1251_s13 = inlined_call_operand.vmem [shape: bf16[64,2], index: 13, kind: input, shape index: {}]   ;;  %s1252_s10 = inlined_call_operand.vmem [shape: f32[1,128], index: 10, kind: input, shape index: {}]   ;;  %s1253_s12 = inlined_call_operand.vmem [shape: f32[1,64], index: 12, kind: input, shape index: {}]   ;;  %s1254_s14 = inlined_call_operand.vmem [shape: f32[1,2], index: 14, kind: input, shape index: {}]   ;;  %s1255_s15 = inlined_call_operand.vmem [shape: f32[8,2], index: 15, kind: output, shape index: {}]  }
   0x1   :  { %v948_v0 = vld [vmem:[%s1240_s5] sm:$0xff]   ;;  %866 = vmatprep.subr.bf16.mxu1 %v976_v1  ;;  %870 = vmatprep.mubr.msk.bf16.mxu1 %vm977_vm0, %v976_v1  ;;  %v52_v3 = vld [vmem:[%s1241_s1 + $0x8] sm:$0xff]  ;;  %v53_v4 = vld [vmem:[%s1241_s1 + $0x10] sm:$0xff]  ;;  %vm237_vm2 = vcmask 261120   ;;  %vm341_vm3 = vcmask 1041409   ;;  %vm469_vm4 = vcmask 523264  }
   0x2   :  { %v51_v2 = vld [vmem:[%s1241_s1] sm:$0xff]  ;;  %947 = vset.pattern.permute.xlu0 %v978_v5  ;;  %856 = vmatprep.subr.bf16.mxu0 %v948_v0  ;;  %v54_v7 = vld [vmem:[%s1241_s1 + $0x18] sm:$0xff]  ;;  %v56_v9 = vld [vmem:[%s1241_s1 + $0x28] sm:$0xff]  ;;  %vm343_vm5 = vcmask 1042434   ;;  %vm345_vm6 = vcmask 1043459   ;;  %vm347_vm7 = vcmask 1044484  }
   0x3   :  { %v59_v6 = vpack.c.bf16 %v52_v3, %v51_v2  ;;  %v55_v8 = vld [vmem:[%s1241_s1 + $0x20] sm:$0xff]  ;;  %857 = vmatpush3.bf16.msra.mxu0 %v948_v0  ;;  %v60_v10 = vpack.c.bf16 %v54_v7, %v53_v4  ;;  %v950_v13 = vld [vmem:[%s1242_s3 + $0x8] sm:$0xff]   ;;  %v57_v16 = vld [vmem:[%s1241_s1 + $0x30] sm:$0xff]  ;;  %vm349_vm8 = vcmask 1045509   ;;  %vm351_vm9 = vcmask 1046534  }
   0x4   :  { %v61_v11 = vpack.c.bf16 %v56_v9, %v55_v8  ;;  %v949_v12 = vld [vmem:[%s1242_s3] sm:$0xff]   ;;  %874 = vmatprep.subr.bf16.mxu0 %v976_v1  ;;  %v58_v17 = vld [vmem:[%s1241_s1 + $0x38] sm:$0xff]  ;;  %v952_v21 = vld [vmem:[%s1245_s8 + $0x8] sm:$0xff]   ;;  %vm353_vm10 = vcmask 1047559   ;;  %vm770_vm12 = vcmask 15360  }
   0x5   :  { %858 = vmatprep.mubr.msk.bf16.mxu0 %vm78_vm1, %v59_v6  ;;  %867 = vmatpush3.bf16.msra.mxu1 %v949_v12  ;;  %v212_v14 = vld [vmem:[%s1243_s0] sm:$0xff]  ;;  %v62_v19 = vpack.c.bf16 %v58_v17, %v57_v16  ;;  %v953_v22 = vld [vmem:[%s1245_s8 + $0x10] sm:$0xff]   ;;  %v954_v23 = vld [vmem:[%s1245_s8 + $0x18] sm:$0xff]  }
   0x6   :  { %859 = vmatmul.mubr.msk.bf16.vlgmr.msra.gmra.mrb[0].mxu0 %vm78_vm1, %v60_v10  ;;  %v282_v15 = vld [vmem:[%s1244_s2] sm:$0xff]  ;;  %868 = vmatprep.subr.bf16.mxu1 %v976_v1  ;;  %v213_v18 = vpack.c.bf16 %v212_v14, %v212_v14  ;;  %v957_v26 = vld [vmem:[%s1245_s8 + $0x28] sm:$0xff]   ;;  %v959_v28 = vld [vmem:[%s1245_s8 + $0x30] sm:$0xff]  }
   0x7   :  { %862 = vmatprep.mubr.msk.bf16.mxu0 %vm78_vm1, %v61_v11  ;;  %286 = vperm.xlu0 %947, %v282_v15   ;;  %v951_v20 = vld [vmem:[%s1245_s8] sm:$0xff]   ;;  %v958_v27 = vld [vmem:[%s1246_s7 + $0x8] sm:$0xff]   ;;  %v960_v29 = vld [vmem:[%s1246_s7 + $0x10] sm:$0xff]  }
   0x8   :  { %875 = vmatpush3.bf16.msra.mxu0 %v951_v20  ;;  %v955_v24 = vld [vmem:[%s1245_s8 + $0x20] sm:$0xff]   ;;  %v961_v30 = vld [vmem:[%s1245_s8 + $0x38] sm:$0xff]  }
   0x9   :  { %869 = vmatpush3.bf16.msra.mxu1 %v950_v13  ;;  %876 = vmatprep.subr.bf16.mxu0 %v976_v1  ;;  %v956_v25 = vld [vmem:[%s1246_s7] sm:$0xff]   ;;  %v962_v31 = vld [vmem:[%s1246_s7 + $0x18] sm:$0xff]  }
   0xa   :  { %894 = vmatprep.subr.bf16.mxu1 %v976_v1  ;;  %v776_v32 = vld [vmem:[%s1249_s6] ss:$0 sm:$0xff] }
   0xb   :  { %v782_v49 = vld [vmem:[%s1250_s4] ss:$0 sm:$0xff] }
   0xc   :  { %871 = vmatmul.mubr.msk.bf16.vlgmr.msra.gmra.mrb[0].mxu1 %vm237_vm2, %v213_v18  ;;  %877 = vmatpush3.bf16.msra.mxu0 %v952_v21 }
   0xd   :  { %902 = vmatprep.mubr.msk.bf16.mxu1 %vm977_vm0, %v976_v1  ;;  %878 = vmatprep.subr.bf16.mxu0 %v976_v1 }
   0xe   :  { %863 = vmatmul.mubr.msk.bf16.gmra.mrb[4].mxu0 %vm78_vm1, %v62_v19  ;;  %895 = vmatpush3.bf16.msra.mxu1 %v956_v25 }
   0xf   :  { %890 = vmatprep.mubr.msk.bf16.mxu0 %vm977_vm0, %v976_v1  ;;  %896 = vmatprep.subr.bf16.mxu1 %v976_v1 }
  0x10   :  { %879 = vmatpush3.bf16.msra.mxu0 %v953_v22 }
  0x11   :  { %880 = vmatprep.subr.bf16.mxu0 %v976_v1 }
  0x12   :  { %897 = vmatpush3.bf16.msra.mxu1 %v958_v27 }
  0x13   :  { %898 = vmatprep.subr.bf16.mxu1 %v976_v1 }
  0x14   :  { %881 = vmatpush3.bf16.msra.mxu0 %v954_v23 }
  0x15   :  { %882 = vmatprep.subr.bf16.mxu0 %v976_v1 }
  0x16   :  { %899 = vmatpush3.bf16.msra.mxu1 %v960_v29 }
  0x17   :  { %900 = vmatprep.subr.bf16.mxu1 %v976_v1 }
  0x18   :  { %883 = vmatpush3.bf16.msra.mxu0 %v955_v24 }
  0x19   :  { %884 = vmatprep.subr.bf16.mxu0 %v976_v1 }
  0x1a   :  { %901 = vmatpush3.bf16.msra.mxu1 %v962_v31 }
  0x1b   :  { %912 = vmatprep.subr.bf16.mxu1 %v976_v1 }
  0x1c   :  { %885 = vmatpush3.bf16.msra.mxu0 %v957_v26 }
  0x1d   :  { %886 = vmatprep.subr.bf16.mxu0 %v976_v1 }
  0x20   :  { %887 = vmatpush3.bf16.msra.mxu0 %v959_v28 }
  0x21   :  { %888 = vmatprep.subr.bf16.mxu0 %v976_v1 }
  0x24   :  { %889 = vmatpush3.bf16.msra.mxu0 %v961_v30 }
  0x25   :  { %906 = vmatprep.subr.bf16.mxu0 %v976_v1 }
  0xd9   :  { %v860_v33 = vpop.f32.mrb[0].mxu0 }
  0xda   :  { %v134_v34 = vadd.f32 %v860_v33, %v776_v32  ;;  %v125_v35 = vpop.f32.mrb[1].mxu0 }
  0xdb   :  { %v126_v36 = vadd.f32 %v776_v32, %v125_v35  ;;  %v861_v37 = vpop.f32.mrb[2].mxu0 }
  0xdc   :  { %v158_v38 = vmax.f32 %v134_v34, 0.0  ;;  %v137_v39 = vadd.f32 %v861_v37, %v776_v32  ;;  %v128_v40 = vpop.f32.mrb[3].mxu0 }
  0xdd   :  { %v156_v41 = vmax.f32 %v126_v36, 0.0  ;;  %v129_v42 = vadd.f32 %v776_v32, %v128_v40 }
  0xde   :  { %v176_v43 = vrot.slane %v158_v38, 4  ;;  %v159_v44 = vmax.f32 %v137_v39, 0.0 }
  0xdf   :  { %v164_v45 = vrot.slane %v156_v41, 4  ;;  %v157_v46 = vmax.f32 %v129_v42, 0.0  ;;  %v275_v50 = vpop.f32.mrb[0].mxu1 }
  0xe0   :  { %v177_v47 = vadd.f32 %v176_v43, %v158_v38  ;;  %v182_v48 = vrot.slane %v159_v44, 4  ;;  %v872_v54 = vpop.f32.mrb[1].mxu1  ;;  %v276_v0 = vadd.f32 %v782_v49, %v275_v50  ;;  %v964_v43 = vld [vmem:[%s1248_s11] sm:$0xff]  }
  0xe1   :  { %v165_v51 = vadd.f32 %v164_v45, %v156_v41  ;;  %v170_v52 = vrot.slane %v157_v46, 4  ;;  %v864_v53 = vpop.f32.mrb[4].mxu0  ;;  %v278_v59 = vpop.f32.mrb[2].mxu1 }
  0xe2   :  { %v178_v55 = vrot.slane %v177_v47, 2  ;;  %v183_v56 = vadd.f32 %v182_v48, %v159_v44  ;;  %v150_v57 = vadd.f32 %v864_v53, %v776_v32  ;;  %v141_v58 = vpop.f32.mrb[5].mxu0  ;;  %v873_v2 = vpop.f32.mrb[3].mxu1  ;;  %v281_v31 = vmax.f32 %v276_v0, 0.0 }
  0xe3   :  { %v166_v60 = vrot.slane %v165_v51, 2  ;;  %v171_v61 = vadd.f32 %v170_v52, %v157_v46  ;;  %v142_v62 = vadd.f32 %v776_v32, %v141_v58  ;;  %v865_v63 = vpop.f32.mrb[6].mxu0  ;;  %v965_v58 = vld [vmem:[%s1248_s11 + $0x8] sm:$0xff]   ;;  %v283_v2 = vlaneseq }
  0xe4   :  { %v179_v3 = vadd.f32 %v178_v55, %v177_v47  ;;  %v184_v4 = vrot.slane %v183_v56, 2  ;;  %v162_v5 = vmax.f32 %v150_v57, 0.0  ;;  %v153_v6 = vadd.f32 %v865_v63, %v776_v32  ;;  %v144_v7 = vpop.f32.mrb[7].mxu0 }
  0xe5   :  { %v167_v8 = vadd.f32 %v166_v60, %v165_v51  ;;  %v172_v9 = vrot.slane %v171_v61, 2  ;;  %v160_v10 = vmax.f32 %v142_v62, 0.0  ;;  %v145_v11 = vadd.f32 %v776_v32, %v144_v7 }
  0xe6   :  { %v180_v12 = vrot.slane %v179_v3, 1  ;;  %v185_v13 = vadd.f32 %v184_v4, %v183_v56  ;;  %v200_v14 = vrot.slane %v162_v5, 4  ;;  %v163_v15 = vmax.f32 %v153_v6, 0.0  ;;  %v966_v6 = vld [vmem:[%s1248_s11 + $0x10] sm:$0xff]  }
  0xe7   :  { %v168_v16 = vrot.slane %v167_v8, 1  ;;  %v173_v17 = vadd.f32 %v172_v9, %v171_v61  ;;  %v188_v18 = vrot.slane %v160_v10, 4  ;;  %v161_v19 = vmax.f32 %v145_v11, 0.0 }
  0xe8   :  { %v181_v20 = vadd.f32 %v180_v12, %v179_v3  ;;  %v186_v21 = vrot.slane %v185_v13, 1  ;;  %v201_v22 = vadd.f32 %v200_v14, %v162_v5  ;;  %v206_v23 = vrot.slane %v163_v15, 4  ;;  %v967_v14 = vld [vmem:[%s1248_s11 + $0x18] sm:$0xff]  }
  0xe9   :  { %v169_v24 = vadd.f32 %v168_v16, %v167_v8  ;;  %v174_v25 = vrot.slane %v173_v17, 1  ;;  %v189_v26 = vadd.f32 %v188_v18, %v160_v10  ;;  %v194_v27 = vrot.slane %v161_v19, 4 }
  0xea   :  { %v187_v28 = vadd.f32 %v186_v21, %v185_v13  ;;  %v202_v29 = vrot.slane %v201_v22, 2  ;;  %v207_v30 = vadd.f32 %v206_v23, %v163_v15  ;;  %v303_v36 = vpack.c.bf16 %v181_v20, %v181_v20  ;;  %v287_v13 = vpop.permute.xlu0 %286  ;;  %v968_v21 = vld [vmem:[%s1248_s11 + $0x20] sm:$0xff]   ;;  %v970_v23 = vld [vmem:[%s1248_s11 + $0x30] sm:$0xff]  }
  0xeb   :  { %v301_v32 = vpack.c.bf16 %v169_v24, %v169_v24  ;;  %v175_v33 = vadd.f32 %v174_v25, %v173_v17  ;;  %v190_v34 = vrot.slane %v189_v26, 2  ;;  %v195_v35 = vadd.f32 %v194_v27, %v161_v19  ;;  %v963_v17 = vld [vmem:[%s1247_s9] sm:$0xff]   ;;  %v971_v24 = vld [vmem:[%s1248_s11 + $0x38] sm:$0xff]  }
  0xec   :  { %v203_v37 = vadd.f32 %v202_v29, %v201_v22  ;;  %v208_v38 = vrot.slane %v207_v30, 2  ;;  %v304_v39 = vpack.c.bf16 %v187_v28, %v187_v28  ;;  %v292_v46 = vpack.c.bf16 %v281_v31, %v281_v31  ;;  %v969_v22 = vld [vmem:[%s1248_s11 + $0x28] sm:$0xff]   ;;  %v972_v25 = vld [vmem:[%s1251_s13] sm:$0xff]  }
  0xed   :  { %v302_v40 = vpack.c.bf16 %v175_v33, %v175_v33  ;;  %v191_v41 = vadd.f32 %v190_v34, %v189_v26  ;;  %v196_v42 = vrot.slane %v195_v35, 2  ;;  %v333_v47 = vunpack.c.l.b16 %v301_v32  ;;  %v973_v26 = vld [vmem:[%s1251_s13 + $0x8] sm:$0xff]  }
  0xee   :  { %v204_v44 = vrot.slane %v203_v37, 1  ;;  %v209_v45 = vadd.f32 %v208_v38, %v207_v30  ;;  %v335_v51 = vunpack.c.l.b16 %v303_v36  ;;  %903 = vmatmul.mubr.msk.bf16.vlgmr.msra.gmra.mrb[4].mxu1 %vm469_vm4, %v292_v46  ;;  %v336_v54 = vunpack.c.l.b16 %v304_v39  ;;  %v975_v46 = vld [vmem:[%s1251_s13 + $0x18] sm:$0xff]  }
  0xef   :  { %v334_v48 = vunpack.c.l.b16 %v302_v40  ;;  %v192_v49 = vrot.slane %v191_v41, 1  ;;  %v197_v50 = vadd.f32 %v196_v42, %v195_v35  ;;  %913 = vmatpush3.bf16.msra.mxu1 %v964_v43  ;;  %928 = vmatprep.mubr.msk.bf16.mxu1 %vm977_vm0, %v976_v1  ;;  %v284_v10 = vand.u32 127, %v283_v2 }
  0xf0   :  { %v205_v52 = vadd.f32 %v204_v44, %v203_v37  ;;  %v210_v53 = vrot.slane %v209_v45, 1  ;;  %914 = vmatprep.subr.bf16.mxu1 %v976_v1  ;;  %v802_v37 = vld [vmem:[%s1252_s10] ss:$0 sm:$0xff] }
  0xf1   :  { %v342_v55 = vsel %vm341_vm3, %v334_v48, %v333_v47  ;;  %v193_v56 = vadd.f32 %v192_v49, %v191_v41  ;;  %v198_v57 = vrot.slane %v197_v50, 1  ;;  %vm288_vm11 = vcmp.eq.s32.totalorder %v284_v10, %v287_v13  ;;  %v803_v47 = vld [vmem:[%s1253_s12] ss:$0 sm:$0xff] }
  0xf2   :  { %v344_v59 = vsel %vm343_vm5, %v335_v51, %v342_v55  ;;  %v211_v60 = vadd.f32 %v210_v53, %v209_v45  ;;  %v307_v0 = vpack.c.bf16 %v205_v52, %v205_v52  ;;  %v786_v19 = vsel %vm288_vm11, 1.0, %v976_v1  ;;  %v974_v45 = vld [vmem:[%s1251_s13 + $0x10] sm:$0xff]  }
  0xf3   :  { %v305_v61 = vpack.c.bf16 %v193_v56, %v193_v56  ;;  %v346_v62 = vsel %vm345_vm6, %v336_v54, %v344_v59  ;;  %v199_v63 = vadd.f32 %v198_v57, %v197_v50  ;;  %915 = vmatpush3.bf16.msra.mxu1 %v965_v58  ;;  %v291_v20 = vpack.c.bf16 %v786_v19, %v786_v19 }
  0xf4   :  { %v308_v4 = vpack.c.bf16 %v211_v60, %v211_v60  ;;  %916 = vmatprep.subr.bf16.mxu1 %v976_v1  ;;  %v339_v9 = vunpack.c.l.b16 %v307_v0 }
  0xf5   :  { %v337_v3 = vunpack.c.l.b16 %v305_v61  ;;  %v306_v5 = vpack.c.bf16 %v199_v63, %v199_v63 }
  0xf6   :  { %v340_v11 = vunpack.c.l.b16 %v308_v4 }
  0xf7   :  { %v348_v7 = vsel %vm347_vm7, %v337_v3, %v346_v62  ;;  %v338_v8 = vunpack.c.l.b16 %v306_v5  ;;  %917 = vmatpush3.bf16.msra.mxu1 %v966_v6 }
  0xf8   :  { %918 = vmatprep.subr.bf16.mxu1 %v976_v1 }
  0xf9   :  { %v350_v12 = vsel %vm349_vm8, %v338_v8, %v348_v7 }
  0xfa   :  { %v352_v15 = vsel %vm351_vm9, %v339_v9, %v350_v12 }
  0xfb   :  { %v354_v16 = vsel %vm353_vm10, %v340_v11, %v352_v15  ;;  %919 = vmatpush3.bf16.msra.mxu1 %v967_v14 }
  0xfc   :  { %v355_v18 = vpack.c.b16 %v354_v16, %v354_v16  ;;  %920 = vmatprep.subr.bf16.mxu1 %v976_v1 }
  0xfe   :  { %891 = vmatmul.mubr.bf16.vlgmr.msra.gmra.mrb[8].mxu0 %v355_v18 }
  0xff   :  { %907 = vmatpush3.bf16.msra.mxu0 %v963_v17  ;;  %908 = vmatprep.mubr.msk.bf16.mxu0 %vm977_vm0, %v976_v1 }
 0x100   :  { %932 = vmatprep.subr.bf16.mxu0 %v976_v1  ;;  %921 = vmatpush3.bf16.msra.mxu1 %v968_v21 }
 0x101   :  { %922 = vmatprep.subr.bf16.mxu1 %v976_v1 }
 0x104   :  { %923 = vmatpush3.bf16.msra.mxu1 %v969_v22 }
 0x105   :  { %924 = vmatprep.subr.bf16.mxu1 %v976_v1 }
 0x106   :  { %909 = vmatmul.mubr.msk.bf16.vlgmr.msra.gmra.mrb[12].mxu0 %vm78_vm1, %v291_v20 }
 0x107   :  { %940 = vmatprep.mubr.msk.bf16.mxu0 %vm977_vm0, %v976_v1  ;;  %933 = vmatpush3.bf16.msra.mxu0 %v972_v25 }
 0x108   :  { %925 = vmatpush3.bf16.msra.mxu1 %v970_v23  ;;  %934 = vmatprep.subr.bf16.mxu0 %v976_v1 }
 0x109   :  { %926 = vmatprep.subr.bf16.mxu1 %v976_v1 }
 0x10b   :  { %935 = vmatpush3.bf16.msra.mxu0 %v973_v26 }
 0x10c   :  { %927 = vmatpush3.bf16.msra.mxu1 %v971_v24  ;;  %936 = vmatprep.subr.bf16.mxu0 %v976_v1 }
 0x10f   :  { %937 = vmatpush3.bf16.msra.mxu0 %v974_v45 }
 0x110   :  { %938 = vmatprep.subr.bf16.mxu0 %v976_v1  ;;  %v812_v1 = vld [vmem:[%s1254_s14] ss:$0 sm:$0xff] }
 0x113   :  { %939 = vmatpush3.bf16.msra.mxu0 %v975_v46 }
 0x1c1   :  { %v507_v27 = vpop.f32.mrb[4].mxu1 }
 0x1c2   :  { %v904_v28 = vpop.f32.mrb[5].mxu1 }
 0x1c3   :  { %v510_v29 = vpop.f32.mrb[6].mxu1 }
 0x1c4   :  { %v905_v30 = vpop.f32.mrb[7].mxu1 }
 0x1d1   :  { %v439_v31 = vpop.f32.mrb[8].mxu0 }
 0x1d2   :  { %v508_v32 = vadd.f32 %v507_v27, %v439_v31  ;;  %v892_v33 = vpop.f32.mrb[9].mxu0 }
 0x1d3   :  { %v442_v34 = vpop.f32.mrb[10].mxu0 }
 0x1d4   :  { %v893_v35 = vpop.f32.mrb[11].mxu0 }
 0x1d9   :  { %v558_v36 = vpop.f32.mrb[12].mxu0 }
 0x1da   :  { %v564_v38 = vadd.f32 %v558_v36, %v508_v32  ;;  %v910_v39 = vpop.f32.mrb[13].mxu0 }
 0x1db   :  { %v561_v40 = vpop.f32.mrb[14].mxu0 }
 0x1dc   :  { %v572_v41 = vadd.f32 %v802_v37, %v564_v38  ;;  %v911_v42 = vpop.f32.mrb[15].mxu0 }
 0x1de   :  { %v573_v43 = vmax.f32 %v572_v41, 0.0 }
 0x1e0   :  { %v574_v44 = vpack.c.bf16 %v573_v43, %v573_v43 }
 0x1e2   :  { %929 = vmatmul.mubr.bf16.vlgmr.msra.gmra.mrb[8].mxu1 %v574_v44 }
 0x2b5   :  { %v680_v48 = vpop.f32.mrb[8].mxu1 }
 0x2b6   :  { %v681_v49 = vadd.f32 %v803_v47, %v680_v48  ;;  %v930_v50 = vpop.f32.mrb[9].mxu1 }
 0x2b7   :  { %v683_v51 = vpop.f32.mrb[10].mxu1 }
 0x2b8   :  { %v686_v52 = vmax.f32 %v681_v49, 0.0  ;;  %v931_v53 = vpop.f32.mrb[11].mxu1 }
 0x2ba   :  { %v687_v54 = vpack.c.bf16 %v686_v52, %v686_v52 }
 0x2bc   :  { %941 = vmatmul.mubr.msk.bf16.vlgmr.msra.gmra.mrb[16].mxu0 %vm469_vm4, %v687_v54 }
 0x38f   :  { %v764_v55 = vpop.f32.mrb[16].mxu0 }
 0x390   :  { %v765_v56 = vadd.f32 %v812_v1, %v764_v55  ;;  %v942_v57 = vpop.f32.mrb[17].mxu0 }
 0x391   :  { %v767_v58 = vpop.f32.mrb[18].mxu0 }
 0x392   :  { %771 = vst.msk [vmem:[%s1255_s15] sm:$0xff] %vm770_vm12, %v765_v56  ;;  %v943_v59 = vpop.f32.mrb[19].mxu0 }

</bundles_post_ra>
